<compile_context>
chip_gen: v6e
topology: v6e:2x2x1
jax: 0.10.0
libtpu: 0.0.40
codegen_flags: <defaults>
</compile_context>

<pallas_src>
import functools

import jax
import jax.numpy as jnp
from jax.experimental import pallas as pl
from jax.experimental.pallas import tpu as pltpu

LANES = 128
_MIB = 1 << 20


def _depth_sigmoid_kernel(x_ref, o_ref, *, min_depth, max_depth):
    # Elementwise; compute in f32 for accuracy, cast back to output dtype.
    # min/max are static module params -> baked in.  If they ever become
    # runtime-varying, pass them as SMEM scalars to avoid recompiles.
    x = x_ref[...].astype(jnp.float32)
    depth = min_depth + jax.nn.sigmoid(x) * (max_depth - min_depth)
    o_ref[...] = depth.astype(o_ref.dtype)


def _vmem_capacity_bytes():
    """VMEM capacity per core (v7x: 64 MiB, v5e/v6e: 128 MiB)."""
    try:
        cap = int(pltpu.get_tpu_info().vmem_capacity_bytes)
        if cap > 0:
            return cap
    except Exception:
        pass
    return 64 * _MIB  # conservative default (v7x-sized)


def _run_body_2d(x2d, out_dtype, min_depth, max_depth, target_tile_bytes):
    """Run the elementwise kernel over a lane-dense (rows, 128) view."""
    rows = x2d.shape[0]
    itemsize = jnp.dtype(x2d.dtype).itemsize
    # Sublane packing for this dtype: f32 -> 8 rows, bf16 -> 16, int8 -> 32.
    sub = max(8, 32 // itemsize)

    # Capacity-aware tile sizing: double-buffered input + output ~= 4x tile;
    # keep 5x tile + slack under the physical VMEM so nothing can OOM.
    vmem_cap = _vmem_capacity_bytes()
    max_tile = max(_MIB, (vmem_cap - 16 * _MIB) // 5)
    min_tile = sub * LANES * itemsize
    tile_bytes = int(min(max(int(target_tile_bytes), min_tile), max_tile))

    br = max(sub, (tile_bytes // (LANES * itemsize)) // sub * sub)
    if br >= rows:
        br = rows  # single block == whole array (small input)
    nb = pl.cdiv(rows, br)
    tile_bytes = br * LANES * itemsize
    vmem_limit = int(min(vmem_cap - 8 * _MIB,
                         max(8 * _MIB, 5 * tile_bytes + 2 * _MIB)))

    kernel = functools.partial(_depth_sigmoid_kernel,
                               min_depth=float(min_depth),
                               max_depth=float(max_depth))

    n_elems = rows * LANES
    cost = pl.CostEstimate(flops=2 * n_elems,
                           transcendentals=n_elems,
                           bytes_accessed=2 * n_elems * itemsize)

    if nb >= 2:
        # Explicit split of the row-block range across the two TensorCores of a
        # v7x chip: outer "parallel" axis of size 2, each core takes ~half the
        # blocks.  Harmless (sequential) on single-core chips.
        nb0 = pl.cdiv(nb, 2)        # blocks per core, rounded up
        last = nb - 1

        def idx(c, j):
            # Clamp so an odd block count never yields an out-of-range block;
            # the single duplicated step rewrites identical data on the same
            # core, which is benign.
            return (jnp.minimum(c * nb0 + j, last), 0)

        grid = (2, nb0)
        semantics = ("parallel", "arbitrary")
    else:
        def idx(i):
            return (i, 0)

        grid = (nb,)
        semantics = ("arbitrary",)

    return pl.pallas_call(
        kernel,
        out_shape=jax.ShapeDtypeStruct((rows, LANES), out_dtype),
        grid=grid,
        in_specs=[pl.BlockSpec((br, LANES), idx)],
        out_specs=pl.BlockSpec((br, LANES), idx),
        compiler_params=pltpu.CompilerParams(
            dimension_semantics=semantics,
            vmem_limit_bytes=vmem_limit,
        ),
        cost_estimate=cost,
    )(x2d)


def depth_sigmoid_prediction(pred, min_depth=0.001, max_depth=10.0,
                             target_tile_bytes=8 << 20):
    """Elementwise depth head: min_depth + sigmoid(pred) * (max_depth - min_depth).

    pred: any-shaped array (e.g. NCHW (B, C, H, W)). Returns same shape/dtype.
    """
    orig_shape = pred.shape
    orig_dtype = pred.dtype
    n = pred.size
    if n == 0:
        return pred

    flat = pred.reshape(-1)
    n_tail = n % LANES
    n_body = n - n_tail

    parts = []
    if n_body:
        body_flat = flat if n_tail == 0 else flat[:n_body]
        x2d = body_flat.reshape(n_body // LANES, LANES)  # zero-copy when aligned
        body_out = _run_body_2d(x2d, orig_dtype, min_depth, max_depth,
                                target_tile_bytes)
        parts.append(body_out.reshape(-1))
    if n_tail:
        # <128-element ragged tail: one tiny fused jnp elementwise op instead of
        # padding/slicing the whole array.
        tail = flat[n_body:].astype(jnp.float32)
        tail = (min_depth + jax.nn.sigmoid(tail) * (max_depth - min_depth))
        parts.append(tail.astype(orig_dtype))
        out = jnp.concatenate(parts)
        # TODO(synk): a 1-D-block pallas_call over the unpadded flat array would
        # also avoid the XLA slice/concatenate copies for large ragged inputs.
    else:
        out = parts[0]
    return out.reshape(orig_shape)


if __name__ == "__main__":
    key = jax.random.PRNGKey(0)
    k1, k2, k3 = jax.random.split(key, 3)

    # 1) 128-aligned NCHW case (zero-copy reshape, single block).
    x = jax.random.normal(k1, (2, 4, 16, 16), dtype=jnp.float32)
    out = jax.block_until_ready(depth_sigmoid_prediction(x, 0.001, 10.0))
    ref = 0.001 + jax.nn.sigmoid(x) * (10.0 - 0.001)
    assert out.shape == x.shape and out.dtype == x.dtype
    assert jnp.max(jnp.abs(out - ref)) < 1e-5

    # 2) Non-128-divisible element count: aligned body via kernel + jnp tail.
    y = jax.random.normal(k2, (2, 3, 5, 7), dtype=jnp.float32)
    out2 = jax.block_until_ready(depth_sigmoid_prediction(y, 0.001, 10.0))
    ref2 = 0.001 + jax.nn.sigmoid(y) * (10.0 - 0.001)
    assert out2.shape == y.shape
    assert jnp.max(jnp.abs(out2 - ref2)) < 1e-5

    # 3) Multi-block case with a tiny tile target: exercises the explicit
    #    2-way core-split grid (2, nb0), the clamped index_map (odd block
    #    count) and the ragged last row-block.
    z = jax.random.normal(k3, (2, 4, 16, 20), dtype=jnp.float32)
    out3 = jax.block_until_ready(
        depth_sigmoid_prediction(z, 0.001, 10.0, target_tile_bytes=4096))
    ref3 = 0.001 + jax.nn.sigmoid(z) * (10.0 - 0.001)
    assert out3.shape == z.shape
    assert jnp.max(jnp.abs(out3 - ref3)) < 1e-5

    print("KERNEL_OK")
</pallas_src>

<mosaic_0001>
module attributes {stable_mosaic.version = 11 : i64} {
  func.func @_depth_sigmoid_kernel(%arg0: i32, %arg1: memref<16x128xf32, #tpu.memory_space<vmem>>, %arg2: memref<16x128xf32, #tpu.memory_space<vmem>>) attributes {dimension_semantics = [#tpu.dimension_semantics<arbitrary>], iteration_bounds = array<i64: 1>, scalar_prefetch = 0 : i64, scratch_operands = 0 : i64, tpu.core_type = #tpu.core_type<tc>, window_params = [{transform_indices = @transform_0, window_bounds = array<i64: 16, 128>}, {transform_indices = @transform_1, window_bounds = array<i64: 16, 128>}]} {
    %c0 = arith.constant 0 : index
    %c0_0 = arith.constant 0 : index
    %0 = vector.load %arg1[%c0, %c0_0] : memref<16x128xf32, #tpu.memory_space<vmem>>, vector<16x128xf32>
    %1 = arith.negf %0 : vector<16x128xf32>
    %2 = math.exp %1 : vector<16x128xf32>
    %cst = arith.constant 1.000000e+00 : f32
    %3 = vector.broadcast %cst : f32 to vector<16x128xf32>
    %4 = arith.addf %3, %2 : vector<16x128xf32>
    %5 = arith.divf %3, %4 : vector<16x128xf32>
    %cst_1 = arith.constant 9.99899959 : f32
    %6 = vector.broadcast %cst_1 : f32 to vector<16x128xf32>
    %7 = arith.mulf %5, %6 : vector<16x128xf32>
    %cst_2 = arith.constant 1.000000e-03 : f32
    %8 = vector.broadcast %cst_2 : f32 to vector<16x128xf32>
    %9 = arith.addf %8, %7 : vector<16x128xf32>
    %c0_3 = arith.constant 0 : index
    %c0_4 = arith.constant 0 : index
    %10 = vector.load %arg2[%c0_3, %c0_4] : memref<16x128xf32, #tpu.memory_space<vmem>>, vector<16x128xf32>
    tpu.vector_store %arg2[%c0_3, %c0_4], %9 {strides = array<i32>} : memref<16x128xf32, #tpu.memory_space<vmem>>, vector<16x128xf32>,
    return
  }
  func.func @transform_0(%arg0: i32) -> (i32, i32) {
    %c0_i32 = arith.constant 0 : i32
    %c0_i32_0 = arith.constant 0 : i32
    return %arg0, %c0_i32 : i32, i32
  }
  func.func @transform_1(%arg0: i32) -> (i32, i32) {
    %c0_i32 = arith.constant 0 : i32
    %c0_i32_0 = arith.constant 0 : i32
    return %arg0, %c0_i32 : i32, i32
  }
}

</mosaic_0001>

<bundles_post_ra>
// kernel: tpu_custom_call.1
= control target key start
LH: loop header
LB: loop body
LE: loop exit
PB: predicated region body
PF: predicated region fallthrough
CT: control target
= control target key end

     0   :  { %6 = vsyncpa [#allocation3], 0  ;;  %s144_s0 = inlined_call_operand.hbm [shape: f32[16,128], index: 0, kind: input, shape index: {}]   ;;  %s145_s1 = inlined_call_operand.hbm [shape: f32[16,128], index: 1, kind: output, shape index: {}]  }
   0x1   :  { %7 = vsyncpa [#allocation4], 0  ;;  %s118_s6 = smov [#allocation2]  }
   0x2   :  { %s13_s7 = sshll.u32 %s118_s6, 4  ;;  %s14_s7 = int_to_ptr.vmem [resolvable:$true] %s13_s7 }
   0x3   :  { %s82_s8 = scalar_lea.vmem %s14_s7, 256  ;;  %p87_p1 = scmp.lt.s32.totalorder %s14_s7, %s14_s7 }
   0x4   :  { %p83_p0 = scmp.ne.s32.totalorder %s14_s7, %s82_s8  ;;  %p88_p2 = scmp.lt.s32.totalorder %s82_s8, %s82_s8 }
   0x6   :  { %p89_p3 = por %p88_p2, %p87_p1 }
   0x8   :  { %p90_p4 = pnand %p89_p3, %p83_p0 }
   0xa   :  { %93 = shalt.err (!%p90_p4)
}
   0xb   :  { %s119_s9 = smov 128   ;;  %s120_s10 = smov 8  }
   0xc   :  { %19 = dma.hbm_to_vmem [thread:$0]  %s144_s0, 256, %s14_s7, [#allocation3], %s119_s9, %s119_s9, %s120_s10  }
   0xd   :  { %114 = dma.done.wait [#allocation3], 256  }
   0xe   :  { %115 = vsyncadd [#allocation3], 4294967040  ;;  %v23_v0 = vld [vmem:[#allocation2] sm:$0xff]  ;;  %v24_v1 = vld [vmem:[#allocation2 + $0x8] sm:$0xff]  ;;  %s121_s13 = smov [#allocation5]  }
   0xf   :  { %v60_v2 = vmul.f32 -1.442695, %v23_v0  ;;  %v61_v3 = vmul.f32 -1.442695, %v24_v1  ;;  %s48_s14 = sshll.u32 %s121_s13, 4  ;;  %s49_s14 = int_to_ptr.vmem [resolvable:$true] %s48_s14 }
  0x10   :  { %s94_s0 = scalar_lea.vmem %s49_s14, 256  ;;  %p99_p6 = scmp.lt.s32.totalorder %s49_s14, %s49_s14 }
  0x11   :  { %66 = vpow2.f32 %v60_v2  ;;  %p95_p5 = scmp.ne.s32.totalorder %s49_s14, %s94_s0  ;;  %p100_p7 = scmp.lt.s32.totalorder %s94_s0, %s94_s0 }
  0x12   :  { %68 = vpow2.f32 %v61_v3 }
  0x13   :  { %p101_p8 = por %p100_p7, %p99_p6 }
  0x15   :  { %p102_p9 = pnand %p101_p8, %p95_p5 }
  0x1e   :  { %v67_v4 = vpop.eup %66 }
  0x1f   :  { %v69_v5 = vpop.eup %68  ;;  %v31_v6 = vadd.f32 1.0, %v67_v4 }
  0x20   :  { %v32_v7 = vadd.f32 1.0, %v69_v5 }
  0x21   :  { %70 = vrcp.f32 %v31_v6 }
  0x22   :  { %72 = vrcp.f32 %v32_v7 }
  0x2e   :  { %v71_v8 = vpop.eup %70 }
  0x2f   :  { %v73_v9 = vpop.eup %72  ;;  %v37_v10 = vmul.f32 9.999, %v71_v8 }
  0x30   :  { %v38_v11 = vmul.f32 9.999, %v73_v9 }
  0x31   :  { %v39_v12 = vadd.f32 0.001, %v37_v10 }
  0x32   :  { %v40_v13 = vadd.f32 0.001, %v38_v11 }
  0x33   :  { %41 = vst [vmem:[#allocation5] sm:$0xff] %v39_v12 }
  0x34   :  { %42 = vst [vmem:[#allocation5 + $0x8] sm:$0xff] %v40_v13 }
  0x35   :  { %105 = shalt.err (!%p102_p9)
}
  0x36   :  { %54 = dma.vmem_to_hbm [thread:$0]  %s49_s14, 256, %s145_s1, [#allocation4], %s119_s9, %s119_s9, %s120_s10  }
  0x37   :  { %116 = dma.done.wait [#allocation4], 256  }
  0x38   :  { %117 = vsyncadd [#allocation4], 4294967040 }
  0x39   :  { %58 = vsyncpa [#allocation3], 1 }
  0x3a   :  { %59 = vsyncpa [#allocation4], 1 }

</bundles_post_ra>
